<compile_context>
chip_gen: v7x
topology: tpu7x:2x2x1
jax: 0.10.0
libtpu: 0.0.40
codegen_flags: <defaults>
</compile_context>

<pallas_src>
import functools

import jax
import jax.numpy as jnp
from jax import lax
from jax.experimental import pallas as pl
from jax.experimental.pallas import tpu as pltpu

LANES = 128        # lane width
SUBLANES = 8       # f32 sublane tile
MAX_TILE_R = 1024  # rows per tile: 1024*128*4B = 512 KiB per input buffer
NUM_SHARDS = 2     # megacore split (v7x); serialized elsewhere


def _pow_const(x, gamma):
    """x ** gamma with gamma a trace-time Python float (integer powers -> VPU muls)."""
    g = float(gamma)
    gi = int(g)
    if g == gi and 0 <= gi <= 8:
        if gi == 0:
            return jnp.ones_like(x)
        r = x
        for _ in range(gi - 1):
            r = r * x
        return r
    return jnp.power(x, jnp.float32(g))


def _focal_kernel(alpha, gamma, inv_scale, tile_r, tiles_per_shard,
                  n_valid, full_tiles, has_ragged,
                  scalars_ref, x_ref, t_ref, out_ref, acc_ref):
    c = pl.program_id(0)            # shard (TensorCore) index
    i = pl.program_id(1)            # tile index within shard

    @pl.when(i == 0)
    def _():
        acc_ref[...] = jnp.zeros_like(acc_ref)

    x = x_ref[...].astype(jnp.float32)
    t = t_ref[...].astype(jnp.float32)

    # Numerically-stable BCE-with-logits (same formula PyTorch uses):
    #   bce = max(x, 0) - x*t + log1p(exp(-|x|))
    bce = jnp.maximum(x, 0.0) - x * t + jnp.log1p(jnp.exp(-jnp.abs(x)))
    pt = jnp.exp(-bce)

    # Whole-batch branch on targets[0] (PyTorch does targets[0].item()); here it
    # is a prefetched scalar flag -> single power, scalar coefficient.
    flag_zero = scalars_ref[0]
    coef = jnp.where(flag_zero == 1, jnp.float32(alpha), jnp.float32(1.0 - alpha))
    base = jnp.where(flag_zero == 1, 1.0 - pt, pt)
    fl = coef * _pow_const(base, gamma) * bce

    def fold(v):
        # (tile_r, 128) -> (8, 128) partial sums; pure VPU vreg adds.
        return v.reshape(tile_r // SUBLANES, SUBLANES, LANES).sum(axis=0)

    if not has_ragged:
        acc_ref[...] += fold(fl)
    else:
        g = c * tiles_per_shard + i   # global tile index

        @pl.when(g < full_tiles)      # fully-valid tile: no mask work
        def _():
            acc_ref[...] += fold(fl)

        @pl.when(g >= full_tiles)     # boundary / padded tile: mask by flat index
        def _():
            row_ids = lax.broadcasted_iota(jnp.int32, (tile_r, LANES), 0)
            col_ids = lax.broadcasted_iota(jnp.int32, (tile_r, LANES), 1)
            gidx = (g * tile_r + row_ids) * LANES + col_ids
            acc_ref[...] += fold(jnp.where(gidx < n_valid, fl, jnp.float32(0.0)))

    @pl.when(i == pl.num_programs(1) - 1)
    def _():
        out_ref[...] = acc_ref[...] * jnp.float32(inv_scale)


def focal_loss(inputs, targets, alpha_focal, gamma_focal,
               logits=True, reduction="mean"):
    """Pallas implementation of FocalLoss.forward (logits=True path)."""
    assert logits, "only the logits=True path is implemented"
    assert reduction in ("mean", "sum")
    # TODO(synk): reduction='none' (full elementwise output) and logits=False
    #             (BCE on probabilities) paths not implemented here.

    x = inputs.reshape(-1)
    t = targets.reshape(-1)
    n = x.shape[0]

    # Lane-dense slab; only a tiny (<128 elem) tail pad when n % 128 != 0.
    rows = -(-n // LANES)
    lane_pad = rows * LANES - n
    if lane_pad:
        x = jnp.pad(x, (0, lane_pad))
        t = jnp.pad(t, (0, lane_pad))
    x = x.reshape(rows, LANES)
    t = t.reshape(rows, LANES)

    # Tiling / sharding (all trace-time Python ints).
    tile_r = min(MAX_TILE_R, -(-rows // SUBLANES) * SUBLANES)
    n_tiles = -(-rows // tile_r)
    num_shards = NUM_SHARDS if n_tiles >= NUM_SHARDS else 1
    tps = -(-n_tiles // num_shards)                 # tiles per shard
    clamp_needed = num_shards * tps > n_tiles       # phantom tiles past the array
    has_ragged = num_shards * tps * tile_r * LANES != n
    full_tiles = n // (tile_r * LANES)              # tiles with no padding at all

    def in_map(c, i, s):
        g = c * tps + i
        if clamp_needed:
            g = jnp.minimum(g, n_tiles - 1)         # keep DMA in-bounds; masked anyway
        return (g, 0)

    out_map = lambda c, i, s: (c, 0)

    flag_zero = (targets.reshape(-1)[0] == 0).astype(jnp.int32).reshape(1)

    inv_scale = (1.0 / n) if reduction == "mean" else 1.0
    kernel = functools.partial(_focal_kernel,
                               float(alpha_focal), float(gamma_focal),
                               float(inv_scale), tile_r, tps,
                               n, full_tiles, has_ragged)

    partials = pl.pallas_call(
        kernel,
        out_shape=jax.ShapeDtypeStruct((num_shards * SUBLANES, LANES), jnp.float32),
        grid_spec=pltpu.PrefetchScalarGridSpec(
            num_scalar_prefetch=1,
            grid=(num_shards, tps),
            in_specs=[
                pl.BlockSpec((tile_r, LANES), in_map),
                pl.BlockSpec((tile_r, LANES), in_map),
            ],
            out_specs=pl.BlockSpec((SUBLANES, LANES), out_map),
            scratch_shapes=[pltpu.VMEM((SUBLANES, LANES), jnp.float32)],
        ),
        compiler_params=pltpu.CompilerParams(
            dimension_semantics=("parallel", "arbitrary")),
    )(flag_zero, x, t)

    # Tiny final cross-lane reduce over the per-shard (8,128) partials.
    return jnp.sum(partials)


def focal_loss_ref(inputs, targets, alpha, gamma, reduction="mean"):
    """Pure-JAX reference matching the PyTorch forward."""
    x = inputs.astype(jnp.float32)
    t = targets.astype(jnp.float32)
    bce = jnp.maximum(x, 0.0) - x * t + jnp.log1p(jnp.exp(-jnp.abs(x)))
    pt = jnp.exp(-bce)
    fl_zero = alpha * (1.0 - pt) ** gamma * bce
    fl_one = (1.0 - alpha) * pt ** gamma * bce
    fl = jnp.where(targets.reshape(-1)[0] == 0, fl_zero, fl_one)
    return jnp.mean(fl) if reduction == "mean" else jnp.sum(fl)


if __name__ == "__main__":
    key = jax.random.PRNGKey(0)
    alpha_focal, gamma_focal = 0.25, 2.0

    # (shape, forced value of targets[0] or None): covers aligned, ragged,
    # multi-dim, both focal branches, and the multi-tile / 2-shard grid path.
    cases = [
        ((2048,), None),
        ((300,), 0.0),
        ((2, 4, 16, 16), 1.0),
        ((2 * 1024 * 128 + 500,), None),
    ]

    for idx, (shape, first) in enumerate(cases):
        k1, k2 = jax.random.split(jax.random.fold_in(key, idx))
        logits_in = jax.random.normal(k1, shape, dtype=jnp.float32)
        labels = jax.random.bernoulli(k2, 0.5, shape).astype(jnp.float32)
        if first is not None:
            labels = labels.reshape(-1).at[0].set(first).reshape(shape)

        for reduction in ("mean", "sum"):
            out = focal_loss(logits_in, labels, alpha_focal, gamma_focal,
                             logits=True, reduction=reduction)
            out = jax.block_until_ready(out)
            ref = focal_loss_ref(logits_in, labels, alpha_focal, gamma_focal,
                                 reduction)
            assert jnp.allclose(out, ref, rtol=1e-5, atol=1e-5), (
                shape, reduction, out, ref)

    print("KERNEL_OK")
</pallas_src>

<mosaic_0001>
module attributes {stable_mosaic.version = 11 : i64} {
  func.func @_focal_kernel(%arg0: i32, %arg1: i32, %arg2: memref<1xi32, #tpu.memory_space<smem>>, %arg3: memref<16x128xf32, #tpu.memory_space<vmem>>, %arg4: memref<16x128xf32, #tpu.memory_space<vmem>>, %arg5: memref<8x128xf32, #tpu.memory_space<vmem>>, %arg6: memref<8x128xf32, #tpu.memory_space<vmem>>) attributes {dimension_semantics = [#tpu.dimension_semantics<parallel>, #tpu.dimension_semantics<arbitrary>], iteration_bounds = array<i64: 1, 1>, scalar_prefetch = 1 : i64, scratch_operands = 1 : i64, tpu.core_type = #tpu.core_type<tc>, window_params = [{transform_indices = @transform_0, window_bounds = array<i64: 16, 128>}, {transform_indices = @transform_1, window_bounds = array<i64: 16, 128>}, {transform_indices = @transform_2, window_bounds = array<i64: 8, 128>}]} {
    %c0_i32 = arith.constant 0 : i32
    %0 = arith.cmpi eq, %arg1, %c0_i32 : i32
    %1 = arith.extui %0 : i1 to i32
    %c0_i32_0 = arith.constant 0 : i32
    %2 = arith.cmpi ne, %1, %c0_i32_0 : i32
    scf.if %2 {
      %cst_18 = arith.constant 0.000000e+00 : f32
      %37 = vector.broadcast %cst_18 : f32 to vector<8x128xf32>
      %c0_19 = arith.constant 0 : index
      %c0_20 = arith.constant 0 : index
      %38 = vector.load %arg6[%c0_19, %c0_20] : memref<8x128xf32, #tpu.memory_space<vmem>>, vector<8x128xf32>
      tpu.vector_store %arg6[%c0_19, %c0_20], %37 {strides = array<i32>} : memref<8x128xf32, #tpu.memory_space<vmem>>, vector<8x128xf32>,
    } else {
    }
    %c0 = arith.constant 0 : index
    %c0_1 = arith.constant 0 : index
    %3 = vector.load %arg3[%c0, %c0_1] : memref<16x128xf32, #tpu.memory_space<vmem>>, vector<16x128xf32>
    %c0_2 = arith.constant 0 : index
    %c0_3 = arith.constant 0 : index
    %4 = vector.load %arg4[%c0_2, %c0_3] : memref<16x128xf32, #tpu.memory_space<vmem>>, vector<16x128xf32>
    %cst = arith.constant 0.000000e+00 : f32
    %5 = vector.broadcast %cst : f32 to vector<16x128xf32>
    %6 = arith.maximumf %3, %5 : vector<16x128xf32>
    %7 = arith.mulf %3, %4 : vector<16x128xf32>
    %8 = arith.subf %6, %7 : vector<16x128xf32>
    %9 = math.absf %3 : vector<16x128xf32>
    %cst_4 = arith.constant 0.000000e+00 : f32
    %10 = vector.broadcast %cst_4 : f32 to vector<16x128xf32>
    %11 = arith.subf %10, %9 : vector<16x128xf32>
    %12 = math.exp %11 : vector<16x128xf32>
    %13 = math.log1p %12 : vector<16x128xf32>
    %14 = arith.addf %8, %13 : vector<16x128xf32>
    %cst_5 = arith.constant 0.000000e+00 : f32
    %15 = vector.broadcast %cst_5 : f32 to vector<16x128xf32>
    %16 = arith.subf %15, %14 : vector<16x128xf32>
    %17 = math.exp %16 : vector<16x128xf32>
    %c0_6 = arith.constant 0 : index
    %18 = memref.load %arg2[%c0_6] : memref<1xi32, #tpu.memory_space<smem>>
    %c1_i32 = arith.constant 1 : i32
    %19 = arith.cmpi eq, %18, %c1_i32 : i32
    %cst_7 = arith.constant 2.500000e-01 : f32
    %cst_8 = arith.constant 7.500000e-01 : f32
    %20 = arith.select %19, %cst_7, %cst_8 : f32
    %c1_i32_9 = arith.constant 1 : i32
    %21 = arith.cmpi eq, %18, %c1_i32_9 : i32
    %cst_10 = arith.constant 1.000000e+00 : f32
    %22 = vector.broadcast %cst_10 : f32 to vector<16x128xf32>
    %23 = arith.subf %22, %17 : vector<16x128xf32>
    %24 = arith.select %21, %23, %17 : vector<16x128xf32>
    %25 = arith.mulf %24, %24 : vector<16x128xf32>
    %26 = vector.broadcast %20 : f32 to vector<16x128xf32>
    %27 = arith.mulf %26, %25 : vector<16x128xf32>
    %28 = arith.mulf %27, %14 : vector<16x128xf32>
    %c0_11 = arith.constant 0 : index
    %c0_12 = arith.constant 0 : index
    %29 = vector.load %arg6[%c0_11, %c0_12] : memref<8x128xf32, #tpu.memory_space<vmem>>, vector<8x128xf32>
    %30 = vector.shape_cast %28 : vector<16x128xf32> to vector<2x8x128xf32>
    %cst_13 = arith.constant dense<0.000000e+00> : vector<8x128xf32>
    %31 = vector.multi_reduction <add>, %30, %cst_13 [0] : vector<2x8x128xf32> to vector<8x128xf32>
    %32 = arith.addf %29, %31 : vector<8x128xf32>
    %c0_14 = arith.constant 0 : index
    %c0_15 = arith.constant 0 : index
    %33 = vector.load %arg6[%c0_14, %c0_15] : memref<8x128xf32, #tpu.memory_space<vmem>>, vector<8x128xf32>
    tpu.vector_store %arg6[%c0_14, %c0_15], %32 {strides = array<i32>} : memref<8x128xf32, #tpu.memory_space<vmem>>, vector<8x128xf32>,
    %c0_i32_16 = arith.constant 0 : i32
    %34 = arith.cmpi eq, %arg1, %c0_i32_16 : i32
    %35 = arith.extui %34 : i1 to i32
    %c0_i32_17 = arith.constant 0 : i32
    %36 = arith.cmpi ne, %35, %c0_i32_17 : i32
    scf.if %36 {
      %c0_18 = arith.constant 0 : index
      %c0_19 = arith.constant 0 : index
      %37 = vector.load %arg6[%c0_18, %c0_19] : memref<8x128xf32, #tpu.memory_space<vmem>>, vector<8x128xf32>
      %cst_20 = arith.constant 4.8828125E-4 : f32
      %38 = vector.broadcast %cst_20 : f32 to vector<8x128xf32>
      %39 = arith.mulf %37, %38 : vector<8x128xf32>
      %c0_21 = arith.constant 0 : index
      %c0_22 = arith.constant 0 : index
      %40 = vector.load %arg5[%c0_21, %c0_22] : memref<8x128xf32, #tpu.memory_space<vmem>>, vector<8x128xf32>
      tpu.vector_store %arg5[%c0_21, %c0_22], %39 {strides = array<i32>} : memref<8x128xf32, #tpu.memory_space<vmem>>, vector<8x128xf32>,
    } else {
    }
    return
  }
  func.func @transform_0(%arg0: i32, %arg1: i32, %arg2: memref<1xi32, #tpu.memory_space<smem>>) -> (i32, i32) {
    %c1_i32 = arith.constant 1 : i32
    %0 = arith.muli %arg0, %c1_i32 : i32
    %1 = arith.addi %0, %arg1 : i32
    %c0_i32 = arith.constant 0 : i32
    %c0_i32_0 = arith.constant 0 : i32
    return %1, %c0_i32 : i32, i32
  }
  func.func @transform_1(%arg0: i32, %arg1: i32, %arg2: memref<1xi32, #tpu.memory_space<smem>>) -> (i32, i32) {
    %c1_i32 = arith.constant 1 : i32
    %0 = arith.muli %arg0, %c1_i32 : i32
    %1 = arith.addi %0, %arg1 : i32
    %c0_i32 = arith.constant 0 : i32
    %c0_i32_0 = arith.constant 0 : i32
    return %1, %c0_i32 : i32, i32
  }
  func.func @transform_2(%arg0: i32, %arg1: i32, %arg2: memref<1xi32, #tpu.memory_space<smem>>) -> (i32, i32) {
    %c0_i32 = arith.constant 0 : i32
    %c0_i32_0 = arith.constant 0 : i32
    return %arg0, %c0_i32 : i32, i32
  }
}

</mosaic_0001>

<bundles_post_ra>
// kernel: tpu_custom_call.1
= control target key start
LH: loop header
LB: loop body
LE: loop exit
PB: predicated region body
PF: predicated region fallthrough
CT: control target
= control target key end

     0   :  { %9 = vsyncpa [#allocation6], 0  ;;  %s299_s0 = inlined_call_operand.<no memory space> [shape: s32[1], index: 0, kind: input, shape index: {}]   ;;  %s300_s1 = inlined_call_operand.hbm [shape: f32[16,128], index: 1, kind: input, shape index: {}]   ;;  %s301_s2 = inlined_call_operand.hbm [shape: f32[16,128], index: 2, kind: input, shape index: {}]   ;;  %s302_s3 = inlined_call_operand.hbm [shape: f32[8,128], index: 3, kind: output, shape index: {}]  }
   0x1   :  { %10 = vsyncpa [#allocation9], 0 }
   0x2   :  { %11 = vsyncpa [#allocation7], 0  ;;  %s235_s12 = smov [#allocation5]   ;;  %s163_s16 = scalar_lea.hbm %s300_s1, 256 }
   0x3   :  { %s21_s13 = sshll.u32 %s235_s12, 4  ;;  %p164_p0 = scmp.ne.s32.totalorder %s300_s1, %s163_s16  ;;  %s22_s13 = int_to_ptr.vmem [resolvable:$true] %s21_s13 }
   0x4   :  { %p167_p1 = scmp.lt.u32.totalorder %s163_s16, %s300_s1 }
   0x6   :  { %p169_p2 = pnand %p167_p1, %p164_p0 }
   0x8   :  { %172 = shalt.err (!%p169_p2)
}
   0x9   :  { %s173_s21 = scalar_lea.vmem %s22_s13, 256  ;;  %p178_p4 = scmp.lt.s32.totalorder %s22_s13, %s22_s13 }
   0xa   :  { %p174_p3 = scmp.ne.s32.totalorder %s22_s13, %s173_s21  ;;  %p179_p5 = scmp.lt.s32.totalorder %s173_s21, %s173_s21 }
   0xc   :  { %p180_p6 = por %p179_p5, %p178_p4 }
   0xe   :  { %p181_p7 = pnand %p180_p6, %p174_p3 }
  0x10   :  { %184 = shalt.err (!%p181_p7)
}
  0x11   :  { %s236_s22 = smov 128   ;;  %s237_s23 = smov 8  }
  0x12   :  { %27 = dma.hbm_to_vmem [thread:$0]  %s300_s1, 256, %s22_s13, [#allocation6], %s236_s22, %s236_s22, %s237_s23  }
  0x13   :  { %s238_s26 = smov [#allocation8]   ;;  %s185_s30 = scalar_lea.hbm %s301_s2, 256 }
  0x14   :  { %s37_s27 = sshll.u32 %s238_s26, 4  ;;  %p186_p8 = scmp.ne.s32.totalorder %s301_s2, %s185_s30  ;;  %s38_s27 = int_to_ptr.vmem [resolvable:$true] %s37_s27 }
  0x15   :  { %p189_p9 = scmp.lt.u32.totalorder %s185_s30, %s301_s2 }
  0x17   :  { %p191_p10 = pnand %p189_p9, %p186_p8 }
  0x19   :  { %194 = shalt.err (!%p191_p10)
}
  0x1a   :  { %s195_s8 = scalar_lea.vmem %s38_s27, 256  ;;  %p200_p12 = scmp.lt.s32.totalorder %s38_s27, %s38_s27 }
  0x1b   :  { %p196_p11 = scmp.ne.s32.totalorder %s38_s27, %s195_s8  ;;  %p201_p13 = scmp.lt.s32.totalorder %s195_s8, %s195_s8 }
  0x1d   :  { %p202_p0 = por %p201_p13, %p200_p12 }
  0x1f   :  { %p203_p1 = pnand %p202_p0, %p196_p11 }
  0x21   :  { %206 = shalt.err (!%p203_p1)
}
  0x22   :  { %43 = dma.hbm_to_vmem [thread:$0]  %s301_s2, 256, %s38_s27, [#allocation9], %s236_s22, %s236_s22, %s237_s23  }
  0x23   :  { %229 = dma.done.wait [#allocation6], 256  }
  0x24   :  { %230 = vsyncadd [#allocation6], 4294967040 }
  0x25   :  { %231 = dma.done.wait [#allocation9], 256  }
  0x26   :  { %232 = vsyncadd [#allocation9], 4294967040  ;;  %v59_v0 = vld [vmem:[#allocation5] sm:$0xff]  ;;  %v60_v1 = vld [vmem:[#allocation5 + $0x8] sm:$0xff]  ;;  %p104_p2 = scmp.eq.s32.totalorder %s299_s0, 1  ;;  %s239_s0 = smov [#allocation10]  }
  0x27   :  { %v69_v2 = vand.u32 2147483647, %v59_v0  ;;  %v70_v3 = vand.u32 2147483647, %v60_v1  ;;  %v61_v14 = vld [vmem:[#allocation8] sm:$0xff]  ;;  %v62_v15 = vld [vmem:[#allocation8 + $0x8] sm:$0xff] }
  0x28   :  { %v63_v17 = vmax.f32 %v59_v0, 0.0  ;;  %v65_v18 = vmul.f32 %v61_v14, %v59_v0  ;;  %v64_v21 = vmax.f32 %v60_v1, 0.0  ;;  %v66_v22 = vmul.f32 %v62_v15, %v60_v1  ;;  %s108_s11 = scalar_select %p104_p2, 1, 0 }
  0x29   :  { %v71_v4 = vsub.f32 0.0, %v69_v2  ;;  %v72_v5 = vsub.f32 0.0, %v70_v3  ;;  %s105_s12 = scalar_select %p104_p2, 0.25, 0.75 }
  0x2a   :  { %v67_v26 = vsub.f32 %v63_v17, %v65_v18  ;;  %v68_v29 = vsub.f32 %v64_v21, %v66_v22  ;;  %v109_v40 = vstv %s108_s11  ;;  %s136_s13 = sshll.u32 %s239_s0, 4  ;;  %s137_s13 = int_to_ptr.vmem [resolvable:$true] %s136_s13 }
  0x2b   :  { %v73_v6 = vmul.f32 1.442695, %v71_v4  ;;  %v75_v7 = vmul.f32 1.442695, %v72_v5  ;;  %vm110_vm2 = vcmp.eq.s32.totalorder %v109_v40, 1  ;;  %v115_v46 = vstv %s105_s12  ;;  %s207_s14 = scalar_lea.vmem %s137_s13, 128  ;;  %p212_p4 = scmp.lt.s32.totalorder %s137_s13, %s137_s13 }
  0x2c   :  { %p208_p3 = scmp.ne.s32.totalorder %s137_s13, %s207_s14  ;;  %p213_p5 = scmp.lt.s32.totalorder %s207_s14, %s207_s14 }
  0x2d   :  { %151 = vpow2.f32 %v73_v6 }
  0x2e   :  { %153 = vpow2.f32 %v75_v7  ;;  %p214_p6 = por %p213_p5, %p212_p4 }
  0x30   :  { %p215_p7 = pnand %p214_p6, %p208_p3 }
  0x37   :  { %v152_v8 = vpop.eup %151 }
  0x38   :  { %v154_v9 = vpop.eup %153  ;;  %v77_v10 = vadd.f32 1.0, %v152_v8  ;;  %v80_v12 = vmul.f32 -0.5, %v152_v8  ;;  %v83_v19 = vand.u32 2147483647, %v152_v8 }
  0x39   :  { %v86_v11 = vadd.f32 1.0, %v154_v9  ;;  %v89_v13 = vmul.f32 -0.5, %v154_v9  ;;  %v92_v23 = vand.u32 2147483647, %v154_v9 }
  0x3a   :  { %155 = vlog2.f32 %v77_v10  ;;  %v81_v16 = vadd.f32 1.0, %v80_v12  ;;  %vm84_vm0 = vcmp.lt.f32.partialorder %v83_v19, 0.0004427343 }
  0x3b   :  { %157 = vlog2.f32 %v86_v11  ;;  %v90_v20 = vadd.f32 1.0, %v89_v13  ;;  %vm93_vm1 = vcmp.lt.f32.partialorder %v92_v23, 0.0004427343 }
  0x3c   :  { %v82_v24 = vmul.f32 %v152_v8, %v81_v16 }
  0x3d   :  { %v91_v27 = vmul.f32 %v154_v9, %v90_v20 }
  0x44   :  { %v156_v25 = vpop.eup %155 }
  0x45   :  { %v158_v28 = vpop.eup %157  ;;  %v79_v30 = vmul.f32 0.6931472, %v156_v25 }
  0x46   :  { %v88_v31 = vmul.f32 0.6931472, %v158_v28 }
  0x47   :  { %v85_v32 = vsel %vm84_vm0, %v82_v24, %v79_v30 }
  0x48   :  { %v94_v33 = vsel %vm93_vm1, %v91_v27, %v88_v31  ;;  %v95_v34 = vadd.f32 %v85_v32, %v67_v26 }
  0x49   :  { %v96_v35 = vadd.f32 %v94_v33, %v68_v29 }
  0x4a   :  { %v97_v36 = vsub.f32 0.0, %v95_v34 }
  0x4b   :  { %v98_v37 = vsub.f32 0.0, %v96_v35 }
  0x4c   :  { %v99_v38 = vmul.f32 1.442695, %v97_v36 }
  0x4d   :  { %v101_v39 = vmul.f32 1.442695, %v98_v37 }
  0x4e   :  { %159 = vpow2.f32 %v99_v38 }
  0x4f   :  { %161 = vpow2.f32 %v101_v39 }
  0x58   :  { %v160_v41 = vpop.eup %159 }
  0x59   :  { %v162_v42 = vpop.eup %161  ;;  %v106_v43 = vsub.f32 1.0, %v160_v41 }
  0x5a   :  { %v107_v44 = vsub.f32 1.0, %v162_v42 }
  0x5b   :  { %v111_v45 = vsel %vm110_vm2, %v106_v43, %v160_v41 }
  0x5c   :  { %v112_v47 = vsel %vm110_vm2, %v107_v44, %v162_v42  ;;  %v113_v48 = vmul.f32 %v111_v45, %v111_v45 }
  0x5d   :  { %v114_v49 = vmul.f32 %v112_v47, %v112_v47 }
  0x5e   :  { %v116_v50 = vmul.f32 %v115_v46, %v113_v48 }
  0x5f   :  { %v117_v51 = vmul.f32 %v115_v46, %v114_v49 }
  0x60   :  { %v118_v52 = vmul.f32 %v116_v50, %v95_v34 }
  0x61   :  { %v119_v53 = vmul.f32 %v117_v51, %v96_v35 }
  0x63   :  { %v121_v54 = vadd.f32 %v119_v53, %v118_v52 }
  0x65   :  { %v128_v55 = vmul.f32 0.00048828125, %v121_v54 }
  0x67   :  { %129 = vst [vmem:[#allocation10] sm:$0xff] %v128_v55 }
  0x68   :  { %218 = shalt.err (!%p215_p7)
}
  0x69   :  { %s219_s17 = scalar_lea.hbm %s302_s3, 128 }
  0x6a   :  { %p220_p8 = scmp.ne.s32.totalorder %s302_s3, %s219_s17  ;;  %p223_p9 = scmp.lt.u32.totalorder %s219_s17, %s302_s3 }
  0x6c   :  { %p225_p10 = pnand %p223_p9, %p220_p8 }
  0x6e   :  { %228 = shalt.err (!%p225_p10)
}
  0x6f   :  { %139 = dma.vmem_to_hbm [thread:$0]  %s137_s13, 128, %s302_s3, [#allocation7]  }
  0x70   :  { %233 = dma.done.wait [#allocation7], 128  }
  0x71   :  { %234 = vsyncadd [#allocation7], 4294967168 }
  0x72   :  { %143 = vsyncpa [#allocation6], 1 }
  0x73   :  { %144 = vsyncpa [#allocation9], 1 }
  0x74   :  { %145 = vsyncpa [#allocation7], 1 }

</bundles_post_ra>
